<compile_context>
chip_gen: v6e
topology: v6e:2x2x1
jax: 0.10.0
libtpu: 0.0.40
codegen_flags: <defaults>
</compile_context>

<pallas_src>
import numpy as np
import jax
import jax.numpy as jnp
from jax.experimental import pallas as pl
from jax.experimental.pallas import tpu as pltpu


def _shift_matrix(L, shift, dtype):
    """S such that (x @ S)[..., l] == roll(x, shift)[..., l] with the
    wrapped-around prefix zeroed (matches torch.roll + [..., :shift] = 0)."""
    zero_count = shift if shift >= 0 else L + shift
    zero_count = max(0, min(L, zero_count))
    S = np.zeros((L, L), dtype=np.float32)
    for l in range(zero_count, L):
        S[(l - shift) % L, l] = 1.0
    return jnp.asarray(S, dtype=dtype)


def _aconv_kernel(x_ref, at_ref, s_ref, o_ref):
    # x_ref: (1, CBLK, V, L), at_ref: (W, V), s_ref: (L, L), o_ref: (1, CBLK, W, L)
    x = x_ref[0]                                                 # (CBLK, V, L)
    cblk = x.shape[0]

    # Broadcast the tiny constant matrices over the C block so both
    # contractions are plain batched matmuls (no output transpose needed).
    s_b = jnp.broadcast_to(s_ref[...], (cblk,) + s_ref.shape)    # (CBLK, L, L)
    a_b = jnp.broadcast_to(at_ref[...], (cblk,) + at_ref.shape)  # (CBLK, W, V)

    # Temporal shift + zero-fill on the MXU (exact: S is a 0/1 selector).
    shifted = jnp.einsum(
        "cvk,ckl->cvl", x, s_b, preferred_element_type=jnp.float32
    )                                                            # (CBLK, V, L)

    # Joint contraction: out[c, w, l] = sum_v A[v, w] * shifted[c, v, l]
    out = jnp.einsum(
        "cwv,cvl->cwl", a_b, shifted, preferred_element_type=jnp.float32
    )                                                            # (CBLK, W, L)

    o_ref[0] = out.astype(o_ref.dtype)


def _pick_cblk(C, V, W, L, itemsize, budget_bytes=8 * 1024 * 1024):
    """Largest divisor of C whose double-buffered in+out blocks fit the budget.

    Budget is conservative so the choice also fits v7x's 64 MiB VMEM with
    plenty of headroom (no vmem_limit_bytes override needed)."""
    best = 1
    for cblk in range(1, C + 1):
        if C % cblk:
            continue
        if 2 * cblk * (V + W) * L * itemsize <= budget_bytes:
            best = cblk
    return best


def aconv(x, A, shift: int):
    """x: (N, C, V, L), A: (V, W), shift: static python int."""
    N, C, V, L = x.shape
    Va, W = A.shape
    assert Va == V, (Va, V)

    a_t = jnp.asarray(A, dtype=x.dtype).T              # (W, V), transposed once
    s_mat = _shift_matrix(L, int(shift), x.dtype)      # (L, L), built once

    itemsize = jnp.dtype(x.dtype).itemsize
    cblk = _pick_cblk(C, V, W, L, itemsize)
    grid = (N, C // cblk)

    flops = 2 * N * C * V * W * L + 2 * N * C * V * L * L
    bytes_accessed = (x.size + a_t.size + s_mat.size + N * C * W * L) * itemsize

    return pl.pallas_call(
        _aconv_kernel,
        out_shape=jax.ShapeDtypeStruct((N, C, W, L), x.dtype),
        grid_spec=pltpu.PrefetchScalarGridSpec(
            num_scalar_prefetch=0,
            grid=grid,
            in_specs=[
                pl.BlockSpec((1, cblk, V, L), lambda n, cb: (n, cb, 0, 0)),
                pl.BlockSpec((W, V), lambda n, cb: (0, 0)),
                pl.BlockSpec((L, L), lambda n, cb: (0, 0)),
            ],
            out_specs=pl.BlockSpec((1, cblk, W, L), lambda n, cb: (n, cb, 0, 0)),
        ),
        compiler_params=pltpu.CompilerParams(
            dimension_semantics=("parallel", "parallel"),
        ),
        cost_estimate=pl.CostEstimate(
            flops=flops, transcendentals=0, bytes_accessed=bytes_accessed
        ),
    )(x, a_t, s_mat)


def aconv_reference(x, A, shift: int):
    """Pure-JAX mirror of the PyTorch forward for verification."""
    align = jnp.roll(x, shift, axis=3)
    align = align.at[..., :shift].set(0.0)
    return jnp.einsum("ncvl,vw->ncwl", align, A)


if __name__ == "__main__":
    key = jax.random.PRNGKey(0)
    kx, ka = jax.random.split(key)

    N, C, V, L = 2, 4, 16, 16   # small shapes; V = number of graph nodes
    W = V                        # adjacency is square (V, W)
    shift = 3

    x = jax.random.normal(kx, (N, C, V, L), dtype=jnp.float32)
    A = jax.random.normal(ka, (V, W), dtype=jnp.float32)

    out = aconv(x, A, shift)
    out = jax.block_until_ready(out)

    ref = aconv_reference(x, A, shift)
    assert out.shape == (N, C, W, L)
    assert jnp.allclose(out, ref, atol=1e-4, rtol=1e-4), "mismatch vs reference"

    print("KERNEL_OK")
</pallas_src>

<mosaic_0001>
module attributes {stable_mosaic.version = 11 : i64} {
  func.func @_aconv_kernel(%arg0: i32, %arg1: i32, %arg2: memref<1x4x16x16xf32, #tpu.memory_space<vmem>>, %arg3: memref<16x16xf32, #tpu.memory_space<vmem>>, %arg4: memref<16x16xf32, #tpu.memory_space<vmem>>, %arg5: memref<1x4x16x16xf32, #tpu.memory_space<vmem>>) attributes {dimension_semantics = [#tpu.dimension_semantics<parallel>, #tpu.dimension_semantics<parallel>], iteration_bounds = array<i64: 2, 1>, scalar_prefetch = 0 : i64, scratch_operands = 0 : i64, tpu.core_type = #tpu.core_type<tc>, window_params = [{transform_indices = @transform_0, window_bounds = array<i64: 1, 4, 16, 16>}, {pipeline_mode = #tpu.pipeline_mode<synchronous>, transform_indices = @transform_1, window_bounds = array<i64: 16, 16>}, {pipeline_mode = #tpu.pipeline_mode<synchronous>, transform_indices = @transform_2, window_bounds = array<i64: 16, 16>}, {transform_indices = @transform_3, window_bounds = array<i64: 1, 4, 16, 16>}]} {
    %c0 = arith.constant 0 : index
    %c0_0 = arith.constant 0 : index
    %c0_1 = arith.constant 0 : index
    %c0_2 = arith.constant 0 : index
    %0 = vector.load %arg2[%c0, %c0_0, %c0_1, %c0_2] : memref<1x4x16x16xf32, #tpu.memory_space<vmem>>, vector<1x4x16x16xf32>
    %1 = vector.shape_cast %0 : vector<1x4x16x16xf32> to vector<4x16x16xf32>
    %c0_3 = arith.constant 0 : index
    %c0_4 = arith.constant 0 : index
    %2 = vector.load %arg4[%c0_3, %c0_4] : memref<16x16xf32, #tpu.memory_space<vmem>>, vector<16x16xf32>
    %3 = vector.shape_cast %2 : vector<16x16xf32> to vector<1x16x16xf32>
    %4 = vector.broadcast %3 : vector<1x16x16xf32> to vector<4x16x16xf32>
    %c0_5 = arith.constant 0 : index
    %c0_6 = arith.constant 0 : index
    %5 = vector.load %arg3[%c0_5, %c0_6] : memref<16x16xf32, #tpu.memory_space<vmem>>, vector<16x16xf32>
    %6 = vector.shape_cast %5 : vector<16x16xf32> to vector<1x16x16xf32>
    %7 = vector.broadcast %6 : vector<1x16x16xf32> to vector<4x16x16xf32>
    "tpu.trace_start"() <{level = 10 : i32, message = "cvk,ckl->cvl"}> : () -> ()
    %cst = arith.constant dense<0.000000e+00> : vector<4x16x16xf32>
    %8 = tpu.matmul %1, %4, %cst {dimension_numbers = #tpu.dot_dimension_numbers<[2], [1], [1], [2], [0, 0, 0, 1, 1, 2], [0], [0]>} : vector<4x16x16xf32>, vector<4x16x16xf32>, vector<4x16x16xf32> -> vector<4x16x16xf32>
    "tpu.trace_stop"() : () -> ()
    "tpu.trace_start"() <{level = 10 : i32, message = "cwv,cvl->cwl"}> : () -> ()
    %cst_7 = arith.constant dense<0.000000e+00> : vector<4x16x16xf32>
    %9 = tpu.matmul %7, %8, %cst_7 {dimension_numbers = #tpu.dot_dimension_numbers<[2], [1], [1], [2], [0, 0, 0, 1, 1, 2], [0], [0]>} : vector<4x16x16xf32>, vector<4x16x16xf32>, vector<4x16x16xf32> -> vector<4x16x16xf32>
    "tpu.trace_stop"() : () -> ()
    %c0_8 = arith.constant 0 : index
    %c0_9 = arith.constant 0 : index
    %c0_10 = arith.constant 0 : index
    %c0_11 = arith.constant 0 : index
    %10 = vector.load %arg5[%c0_8, %c0_9, %c0_10, %c0_11] : memref<1x4x16x16xf32, #tpu.memory_space<vmem>>, vector<1x4x16x16xf32>
    %11 = vector.shape_cast %10 : vector<1x4x16x16xf32> to vector<4x16x16xf32>
    %12 = vector.shape_cast %9 : vector<4x16x16xf32> to vector<1x4x16x16xf32>
    tpu.vector_store %arg5[%c0_8, %c0_9, %c0_10, %c0_11], %12 {strides = array<i32>} : memref<1x4x16x16xf32, #tpu.memory_space<vmem>>, vector<1x4x16x16xf32>,
    return
  }
  func.func @transform_0(%arg0: i32, %arg1: i32) -> (i32, i32, i32, i32) {
    %c0_i32 = arith.constant 0 : i32
    %c0_i32_0 = arith.constant 0 : i32
    %c0_i32_1 = arith.constant 0 : i32
    return %arg0, %arg1, %c0_i32, %c0_i32_0 : i32, i32, i32, i32
  }
  func.func @transform_1(%arg0: i32, %arg1: i32) -> (i32, i32) {
    %c0_i32 = arith.constant 0 : i32
    %c0_i32_0 = arith.constant 0 : i32
    %c0_i32_1 = arith.constant 0 : i32
    return %c0_i32, %c0_i32_0 : i32, i32
  }
  func.func @transform_2(%arg0: i32, %arg1: i32) -> (i32, i32) {
    %c0_i32 = arith.constant 0 : i32
    %c0_i32_0 = arith.constant 0 : i32
    %c0_i32_1 = arith.constant 0 : i32
    return %c0_i32, %c0_i32_0 : i32, i32
  }
  func.func @transform_3(%arg0: i32, %arg1: i32) -> (i32, i32, i32, i32) {
    %c0_i32 = arith.constant 0 : i32
    %c0_i32_0 = arith.constant 0 : i32
    %c0_i32_1 = arith.constant 0 : i32
    return %arg0, %arg1, %c0_i32, %c0_i32_0 : i32, i32, i32, i32
  }
}

</mosaic_0001>

<bundles_post_ra>
// kernel: tpu_custom_call.1
= control target key start
LH: loop header
LB: loop body
LE: loop exit
PB: predicated region body
PF: predicated region fallthrough
CT: control target
= control target key end

     0   :  { %8 = vsyncpa [#allocation3], 0  ;;  %s1654_s0 = inlined_call_operand.hbm [shape: f32[2,4,16,16], index: 0, kind: input, shape index: {}]   ;;  %s1655_s1 = inlined_call_operand.hbm [shape: f32[16,16], index: 1, kind: input, shape index: {}]   ;;  %s1656_s2 = inlined_call_operand.hbm [shape: f32[16,16], index: 2, kind: input, shape index: {}]   ;;  %s1657_s3 = inlined_call_operand.hbm [shape: f32[2,4,16,16], index: 3, kind: output, shape index: {}]  }
   0x1   :  { %10 = vsyncpa [#allocation3 + $0x1], 0 }
   0x2   :  { %11 = vsyncpa [#allocation6], 0 }
   0x3   :  { %12 = vsyncpa [#allocation4], 0 }
   0x4   :  { %14 = vsyncpa [#allocation4 + $0x1], 0  ;;  %s1419_s12 = smov 0   ;;  %s1421_s13 = smov 0  }
   0x5   :  { %s1423_s14 = smov 0   ;;  %s1425_s15 = smov 0  }
   0x6   :  { %s1427_s16 = smov 0   ;;  %s1429_s17 = smov 0  }
   0x7 LB: > { %s1013_s18 = sadd.s32 4294967295, %s1389_s17   ;;  %s1014_s19 = sadd.s32 4294967294, %s1389_s17   ;;  %s1389_s17 = sphi %s1429_s17, %s20_s17   ;;  %s1385_s16 = sphi %s1427_s16, %s1674_s16   ;;  %s1381_s15 = sphi %s1425_s15, %s1673_s15   ;;  %s1377_s14 = sphi %s1423_s14, %s1672_s14   ;;  %s1373_s13 = sphi %s1421_s13, %s1671_s13   ;;  %s1369_s12 = sphi %s1419_s12, %s1670_s12  }
   0x8   : > { %p54_p0 = scmp.ne.s32.totalorder %s1373_s13, %s1369_s12  ;;  %p1453_p1 = scmp.eq.s32.totalorder %s1013_s18, 0 }
   0x9   : > { %p1457_p2 = scmp.eq.s32.totalorder %s1013_s18, 1  ;;  %p128_p3 = scmp.eq.s32.totalorder %s1014_s19, 1 }
   0xa   : > { %p1463_p4 = por %p1453_p1, %p54_p0  ;;  %p1015_p5 = scmp.ge.s32.totalorder %s1389_s17, 1 }
   0xb   : > { %p1468_p6 = por %p128_p3, %p54_p0  ;;  %p135_p7 = scmp.lt.s32.totalorder %s1389_s17, 3 }
   0xc   : > { %s1391_s25 = smov [#allocation5]   ;;  %s1392_s28 = smov [#allocation7]  }
   0xd   : > { %s1662_s23 = scalar_select %p1468_p6, 1, 0 }
   0xe   : > { %p1473_p8 = pnand %p1015_p5, %p135_p7  ;;  %s147_s26 = sshll.u32 %s1391_s25, 4  ;;  %s148_s26 = int_to_ptr.vmem [resolvable:$true] %s147_s26 }
   0xf   : > { %s160_s29 = sshll.u32 %s1392_s28, 4  ;;  %s1236_s30 = scalar_lea.vmem %s148_s26, 256  ;;  %s161_s29 = int_to_ptr.vmem [resolvable:$true] %s160_s29 }
  0x10   : > { %p1150_p9 = pneg %p1473_p8  ;;  %p1237_p13 = scmp.ne.s32.totalorder %s148_s26, %s1236_s30 }
  0x11   : > { %p1244_p5 = scmp.lt.s32.totalorder %s148_s26, %s148_s26  ;;  %p1245_p7 = scmp.lt.s32.totalorder %s1236_s30, %s1236_s30 }
  0x12   : > { %p1482_p11 = pnand %p1150_p9, %p1453_p1 }
  0x13   : > { %p1246_p10 = por %p1245_p7, %p1244_p5 }
  0x14   : > { %p1227_p12 = pneg %p1482_p11 }
  0x16   : > { %p1239_p0 = pnand %p1237_p13, %p1227_p12 }
  0x18   : > { %p1240_p3 = pneg %p1239_p0 }
  0x1a   : > { %p1247_p9 = pnand %p1246_p10, %p1240_p3 }
  0x1c   : > { %1250 = shalt.err (!%p1247_p9)
}
  0x1d   : > { %s1658_s4 = smov 128   ;;  %s1394_s5 = smov 8  }
  0x1e   : > { %1153 = dma.hbm_to_vmem [thread:$0]  (!%p1482_p11), %s1655_s1, 256, %s148_s26, [#allocation6], %s1658_s4, %s1658_s4, %s1394_s5  }
  0x1f   : > { %s1262_s8 = scalar_lea.vmem %s161_s29, 256  ;;  %p1270_p10 = scmp.lt.s32.totalorder %s161_s29, %s161_s29 }
  0x20   : > { %p1263_p13 = scmp.ne.s32.totalorder %s161_s29, %s1262_s8  ;;  %p1271_p3 = scmp.lt.s32.totalorder %s1262_s8, %s1262_s8 }
  0x22   : > { %p1265_p0 = pnand %p1263_p13, %p1227_p12  ;;  %p1272_p7 = por %p1271_p3, %p1270_p10 }
  0x24   : > { %p1266_p5 = pneg %p1265_p0 }
  0x26   : > { %p1273_p9 = pnand %p1272_p7, %p1266_p5 }
  0x28   : > { %1276 = shalt.err (!%p1273_p9)
}
  0x29   : > { %1156 = dma.hbm_to_vmem [thread:$0]  (!%p1482_p11), %s1656_s2, 256, %s161_s29, [#allocation6], %s1658_s4, %s1658_s4, %s1394_s5  }
  0x2a   : > { %s32_s11 = sadd.s32 1, %s1385_s16  ;;  %s41_s18 = sadd.s32 1, %s1377_s14 }
  0x2b   : > { %p34_p12 = scmp.ge.s32.totalorder %s32_s11, 2  ;;  %p48_p13 = scmp.ne.s32.totalorder %s1377_s14, %s1373_s13 }
  0x2c   : > { %p49_p0 = scmp.eq.s32.totalorder %s1389_s17, 0  ;;  %p1167_p5 = scmp.lt.s32.totalorder %s1389_s17, 2 }
  0x2d   : > { %s1676_s11 = smov (%p34_p12, %s32_s11), 0  ;;  %p1520_p3 = por %p1457_p2, %p48_p13 }
  0x2e   : > { %p50_p10 = por %p49_p0, %p48_p13  ;;  %s36_s25 = ssub.s32 %s1385_s16, %s1676_s11 }
  0x2f   : > { %s174_s26 = sand.u32 1, %s1377_s14   ;;  %p39_p7 = scmp.eq.s32.totalorder %s36_s25, 0 }
  0x30   : > { %s1019_s27 = sshll.u32 %s174_s26, 6  ;;  %s1048_s28 = sshll.u32 %s1385_s16, 10 }
  0x31   : > { %s1529_s29 = scalar_select %p39_p7, %s1377_s14, %s41_s18  }
  0x32   : > { %s187_s7 = scalar_lea.hbm %s1654_s0, %s1048_s28  ;;  %s178_s8 = scalar_lea.vmem [#allocation2], %s1019_s27 }
  0x33   : > { %s188_s9 = sshll.u32 %s178_s8, 4  ;;  %p1536_p11 = pnand %p1167_p5, %p50_p10  ;;  %s189_s9 = int_to_ptr.vmem [resolvable:$true] %s188_s9 }
  0x34   : > { %s175_s10 = scalar_lea.sflag [#allocation3], %s174_s26  ;;  %s1290_s25 = scalar_lea.vmem %s189_s9, 1024 }
  0x35   : > { %p1279_p2 = pneg %p1536_p11  ;;  %p1291_p9 = scmp.ne.s32.totalorder %s189_s9, %s1290_s25 }
  0x36   : > { %s1395_s18 = smov [#allocation2]  }
  0x37   : > { %p1293_p12 = pnand %p1291_p9, %p1279_p2  ;;  %s1295_s4 = sshll.u32 %s1395_s18, 4  ;;  %s1296_s4 = int_to_ptr.vmem [resolvable:$false] %s1295_s4 }
  0x38   : > { %s1297_s28 = scalar_lea.vmem %s1296_s4, 2048  ;;  %p1298_p0 = scmp.lt.s32.totalorder %s189_s9, %s1296_s4 }
  0x39   : > { %p1294_p13 = pneg %p1293_p12  ;;  %p1299_p7 = scmp.lt.s32.totalorder %s1297_s28, %s1290_s25 }
  0x3b   : > { %p1300_p6 = por %p1299_p7, %p1298_p0 }
  0x3d   : > { %p1301_p5 = pnand %p1300_p6, %p1294_p13 }
  0x3f   : > { %1304 = shalt.err (!%p1301_p5)
}
  0x40   : > { %s1667_s27 = smov 128   ;;  %200 = sbr.rel (%p1473_p8) target bundleno = 490 (0x1ea), region = 32 }
  0x41   : > { %1160 = dma.hbm_to_vmem [thread:$0]  (!%p1536_p11), %s187_s7, 1024, %s189_s9, %s175_s10, %s1667_s27, %s1667_s27, %s1394_s5  }
  0x42   : > { %s1550_s26 = sand.u32 (!%p1473_p8), 1, %s1373_s13  }
  0x43   : > { %s1023_s4 = sshll.u32 (!%p1473_p8), %s1550_s26, 6  ;;  %s203_s30 = scalar_lea.sflag (!%p1473_p8), [#allocation3], %s1550_s26 }
  0x44   : > { %s1556_s6 = scalar_lea.vmem (!%p1473_p8), [#allocation2], %s1023_s4 }
  0x45   : > { %1356 = dma.done.wait (%p1463_p4), %s203_s30, 1024  }
  0x46   : > { %1358 = vsyncadd (%p1463_p4), %s203_s30, 4294966272 }
  0x47   : > { %1360 = dma.done.wait (%p1453_p1), [#allocation6], 512  }
  0x48   : > { %1362 = vsyncadd (%p1453_p1), [#allocation6], 4294966784  ;;  %v248_v0 = vld [vmem:[#allocation7 + $0x8] sm:$0xff]  ;;  %v247_v1 = vld [vmem:[#allocation7] sm:$0xff]  ;;  %vm251_vm0 = vcmask 130048   ;;  %s236_s20 = scalar_lea.vmem [#allocation8], %s1023_s4 }
  0x49   : > { %1082 = vmatprep.subr.mxu0 %v248_v0  ;;  %1089 = vmatprep.subr.mxu1 %v248_v0  ;;  %v239_v2 = vld [vmem:[%s1556_s6] sm:$0xff]  ;;  %v241_v3 = vld [vmem:[%s1556_s6 + $0x10] sm:$0xff]  ;;  %v240_v4 = vld [vmem:[%s1556_s6 + $0x8] sm:$0xff]  ;;  %s907_s22 = sshll.u32 %s236_s20, 4  ;;  %s1049_s24 = sshll.u32 %s1381_s15, 10  ;;  %s1597_s22 = int_to_ptr.vmem [resolvable:$true] %s907_s22 }
  0x4a   : > { %1083 = vmatpush3.msra.mxu0 %v248_v0  ;;  %1090 = vmatpush3.msra.mxu1 %v248_v0  ;;  %v242_v5 = vld [vmem:[%s1556_s6 + $0x18] sm:$0xff]  ;;  %v243_v6 = vld [vmem:[%s1556_s6 + $0x20] sm:$0xff]  ;;  %v245_v7 = vld [vmem:[%s1556_s6 + $0x30] sm:$0xff]  ;;  %s1602_s8 = scalar_lea.hbm %s1657_s3, %s1049_s24  ;;  %s891_s15 = scalar_lea.sflag [#allocation4], %s1550_s26 }
  0x4b   : > { %1084 = vmatprep.subr.mxu0 %v247_v1  ;;  %1091 = vmatprep.subr.mxu1 %v247_v1  ;;  %v244_v8 = vld [vmem:[%s1556_s6 + $0x28] sm:$0xff]  ;;  %v246_v9 = vld [vmem:[%s1556_s6 + $0x38] sm:$0xff]  ;;  %v249_v10 = vld [vmem:[#allocation5] sm:$0xff]  ;;  %s1305_s9 = scalar_lea.vmem %s1597_s22, 1024  ;;  %s1396_s21 = smov [#allocation8]  }
  0x4c   : > { %1085 = vmatpush3.msra.mxu0 %v247_v1  ;;  %1086 = vmatprep.mubr.msk.f32.mxu0 %vm251_vm0, %v239_v2  ;;  %v250_v15 = vld [vmem:[#allocation5 + $0x8] sm:$0xff]  ;;  %p1306_p1 = scmp.ne.s32.totalorder %s1597_s22, %s1305_s9  ;;  %s1309_s10 = sshll.u32 %s1396_s21, 4  ;;  %s1310_s10 = int_to_ptr.vmem [resolvable:$false] %s1309_s10 }
  0x4d   : > { %1092 = vmatpush3.msra.mxu1 %v247_v1  ;;  %1093 = vmatprep.mubr.msk.f32.mxu1 %vm251_vm0, %v241_v3  ;;  %s1311_s25 = scalar_lea.vmem %s1310_s10, 2048  ;;  %p1312_p8 = scmp.lt.s32.totalorder %s1597_s22, %s1310_s10 }
  0x4e   : > { %1087 = vmatmul.mubr.msk.f32.vlgmr.msra.gmra.mxu0 %vm251_vm0, %v240_v4  ;;  %1094 = vmatmul.mubr.msk.f32.vlgmr.msra.gmra.mxu1 %vm251_vm0, %v242_v5  ;;  %p1307_p4 = pnand %p1306_p1, %p1520_p3  ;;  %p1313_p10 = scmp.lt.s32.totalorder %s1311_s25, %s1305_s9 }
  0x4f   : > { %1096 = vmatprep.subr.mxu0 %v248_v0  ;;  %1103 = vmatprep.subr.mxu1 %v248_v0 }
  0x50   : > { %1097 = vmatpush3.msra.mxu0 %v248_v0  ;;  %1104 = vmatpush3.msra.mxu1 %v248_v0  ;;  %p1308_p6 = pneg %p1307_p4  ;;  %p1314_p11 = por %p1313_p10, %p1312_p8 }
  0x51   : > { %1098 = vmatprep.subr.mxu0 %v247_v1  ;;  %1105 = vmatprep.subr.mxu1 %v247_v1 }
  0x52   : > { %1099 = vmatpush3.msra.mxu0 %v247_v1  ;;  %1100 = vmatprep.mubr.msk.f32.mxu0 %vm251_vm0, %v243_v6  ;;  %p1315_p2 = pnand %p1314_p11, %p1308_p6 }
  0x53   : > { %1106 = vmatpush3.msra.mxu1 %v247_v1  ;;  %1107 = vmatprep.mubr.msk.f32.mxu1 %vm251_vm0, %v245_v7 }
  0x54   : > { %1101 = vmatmul.mubr.msk.f32.vlgmr.msra.gmra.mxu0 %vm251_vm0, %v244_v8  ;;  %1108 = vmatmul.mubr.msk.f32.vlgmr.msra.gmra.mxu1 %vm251_vm0, %v246_v9 }
  0x55   : > { %1114 = vmatprep.mubr.msk.f32.mxu0 %vm251_vm0, %v249_v10  ;;  %1121 = vmatprep.mubr.msk.f32.mxu1 %vm251_vm0, %v249_v10 }
 0x10e   : > { %v1088_v11 = vpop.f32.mrf.mxu0  ;;  %v1095_v12 = vpop.f32.mrf.mxu1 }
 0x10f   : > { %1110 = vmatprep.subr.mxu0 %v1088_v11  ;;  %1117 = vmatprep.subr.mxu1 %v1095_v12 }
 0x110   : > { %v324_v13 = vpop.f32.mrf.mxu0  ;;  %v405_v14 = vpop.f32.mrf.mxu1  ;;  %1111 = vmatpush3.msra.mxu0 %v1088_v11  ;;  %1118 = vmatpush3.msra.mxu1 %v1095_v12 }
 0x111   : > { %1112 = vmatprep.subr.mxu0 %v324_v13  ;;  %1119 = vmatprep.subr.mxu1 %v405_v14 }
 0x112   : > { %1113 = vmatpush3.msra.mxu0 %v324_v13  ;;  %1120 = vmatpush3.msra.mxu1 %v405_v14 }
 0x113   : > { %1115 = vmatmul.mubr.msk.f32.vlgmr.msra.gmra.mxu0 %vm251_vm0, %v250_v15  ;;  %1122 = vmatmul.mubr.msk.f32.vlgmr.msra.gmra.mxu1 %vm251_vm0, %v250_v15 }
 0x114   : > { %v1102_v16 = vpop.f32.mrf.mxu0  ;;  %v1109_v17 = vpop.f32.mrf.mxu1  ;;  %1128 = vmatprep.mubr.msk.f32.mxu0 %vm251_vm0, %v249_v10  ;;  %1135 = vmatprep.mubr.msk.f32.mxu1 %vm251_vm0, %v249_v10 }
 0x115   : > { %1124 = vmatprep.subr.mxu0 %v1102_v16  ;;  %1131 = vmatprep.subr.mxu1 %v1109_v17 }
 0x116   : > { %v486_v18 = vpop.f32.mrf.mxu0  ;;  %v567_v19 = vpop.f32.mrf.mxu1  ;;  %1125 = vmatpush3.msra.mxu0 %v1102_v16  ;;  %1132 = vmatpush3.msra.mxu1 %v1109_v17 }
 0x117   : > { %1126 = vmatprep.subr.mxu0 %v486_v18  ;;  %1133 = vmatprep.subr.mxu1 %v567_v19 }
 0x118   : > { %1127 = vmatpush3.msra.mxu0 %v486_v18  ;;  %1134 = vmatpush3.msra.mxu1 %v567_v19 }
 0x119   : > { %1129 = vmatmul.mubr.msk.f32.vlgmr.msra.gmra.mxu0 %vm251_vm0, %v250_v15  ;;  %1136 = vmatmul.mubr.msk.f32.vlgmr.msra.gmra.mxu1 %vm251_vm0, %v250_v15 }
 0x1d3   : > { %v1116_v20 = vpop.f32.mrf.mxu0  ;;  %v1123_v21 = vpop.f32.mrf.mxu1 }
 0x1d4   : > { %883 = vst.msk [vmem:[%s236_s20 + $0x8] sm:$0xff] %vm251_vm0, %v1116_v20  ;;  %885 = vst.msk [vmem:[%s236_s20 + $0x18] sm:$0xff] %vm251_vm0, %v1123_v21 }
 0x1d5   : > { %v648_v22 = vpop.f32.mrf.mxu0  ;;  %v723_v23 = vpop.f32.mrf.mxu1 }
 0x1d6   : > { %882 = vst.msk [vmem:[%s236_s20] sm:$0xff] %vm251_vm0, %v648_v22  ;;  %884 = vst.msk [vmem:[%s236_s20 + $0x10] sm:$0xff] %vm251_vm0, %v723_v23 }
 0x1d9   : > { %v1130_v24 = vpop.f32.mrf.mxu0  ;;  %v1137_v25 = vpop.f32.mrf.mxu1 }
 0x1da   : > { %887 = vst.msk [vmem:[%s236_s20 + $0x28] sm:$0xff] %vm251_vm0, %v1130_v24  ;;  %889 = vst.msk [vmem:[%s236_s20 + $0x38] sm:$0xff] %vm251_vm0, %v1137_v25 }
 0x1db   : > { %v798_v26 = vpop.f32.mrf.mxu0  ;;  %v873_v27 = vpop.f32.mrf.mxu1 }
 0x1dc   : > { %886 = vst.msk [vmem:[%s236_s20 + $0x20] sm:$0xff] %vm251_vm0, %v798_v26  ;;  %888 = vst.msk [vmem:[%s236_s20 + $0x30] sm:$0xff] %vm251_vm0, %v873_v27 }
 0x1dd   : > { %1318 = shalt.err (!%p1315_p2)
}
 0x1de   : > { %s1319_s18 = scalar_lea.hbm %s1602_s8, 1024  ;;  %s1323_s4 = scalar_lea.hbm %s1657_s3, 2048 }
 0x1df   : > { %p1320_p9 = scmp.ne.s32.totalorder %s1602_s8, %s1319_s18  ;;  %p1324_p0 = scmp.lt.s32.totalorder %s1602_s8, %s1657_s3 }
 0x1e0   : > { %p1325_p7 = scmp.lt.s32.totalorder %s1323_s4, %s1319_s18 }
 0x1e1   : > { %p1321_p12 = pnand %p1320_p9, %p1520_p3 }
 0x1e2   : > { %p1326_p5 = por %p1325_p7, %p1324_p0 }
 0x1e3   : > { %p1322_p13 = pneg %p1321_p12 }
 0x1e5   : > { %p1327_p1 = pnand %p1326_p5, %p1322_p13 }
 0x1e7   : > { %1330 = shalt.err (!%p1327_p1)
}
 0x1e8   : > { %s1397_s20 = smov 128   ;;  %s1398_s24 = smov 8  }
 0x1e9   : > { %1148 = dma.vmem_to_hbm [thread:$0]  (%p1520_p3), %s1597_s22, 1024, %s1602_s8, %s891_s15, %s1397_s20, %s1397_s20, %s1398_s24  }
 0x1ea PF: > { %s922_s5 = sand.u32 1, %s1369_s12   ;;  %p1668_p4 = scmp.ne.s32.totalorder %s1662_s23, 0 }
 0x1eb   : > { %p1669_p6 = scmp.ge.s32.totalorder %s1389_s17, 2  ;;  %s923_s7 = scalar_lea.sflag [#allocation4], %s922_s5 }
 0x1ed   : > { %p1162_p8 = pnand %p1669_p6, %p1668_p4 }
 0x1ef   : > { %p1163_p10 = pneg %p1162_p8 }
 0x1f1   : > { %1364 = dma.done.wait (%p1163_p10), %s923_s7, 1024  }
 0x1f2   : > { %1366 = vsyncadd (%p1163_p10), %s923_s7, 4294966272  ;;  %s20_s17 = sadd.s32 1, %s1389_s17   ;;  %s1670_s12 = smov %s1373_s13 }
 0x1f3   : > { %p17_p11 = scmp.ge.s32.totalorder %s20_s17, 4   ;;  %s1671_s13 = smov %s1377_s14 }
 0x1f4   : > { %s1672_s14 = smov %s1529_s29  ;;  %s1673_s15 = smov %s1385_s16 }
 0x1f5   : > { %s1674_s16 = smov %s1676_s11  ;;  %19 = sbr.rel (!%p17_p11) target bundleno = 7 (0x7), region = 85 }
 0x1fa   :  { %928 = vsyncpa [#allocation3], 1 }
 0x1fb   :  { %930 = vsyncpa [#allocation3 + $0x1], 1 }
 0x1fc   :  { %931 = vsyncpa [#allocation6], 1 }
 0x1fd   :  { %932 = vsyncpa [#allocation4], 1 }
 0x1fe   :  { %934 = vsyncpa [#allocation4 + $0x1], 1 }

</bundles_post_ra>
